<compile_context>
chip_gen: v6e
topology: v6e:2x2x1
jax: 0.10.0
libtpu: 0.0.40
codegen_flags: <defaults>
</compile_context>

<pallas_src>
import functools

import jax
import jax.numpy as jnp
from jax.experimental import pallas as pl
from jax.experimental.pallas import tpu as pltpu

BN_EPS = 1e-5


def _round_up(x, m):
    return ((x + m - 1) // m) * m


def _vmem_limit_bytes():
    """Generation-aware scoped-VMEM limit (v5e/v6e: ~96 MiB, v7x: ~48 MiB)."""
    cap = 64 * 1024 * 1024
    try:
        info = pltpu.get_tpu_info()
        cap = int(getattr(info, "vmem_capacity_bytes", cap))
    except Exception:
        pass
    return int(max(32 * 1024 * 1024, min(cap * 3 // 4, 100 * 1024 * 1024)))


def _budget_tile(cin, cout, itemsize, vmem_limit):
    """Largest lane count per grid step that keeps double-buffered blocks in budget."""
    per_lane = 2 * (cin + cout) * max(itemsize, 4)   # in + out, double buffered
    t = (vmem_limit // 2) // per_lane
    t = (t // 128) * 128
    return int(max(128, min(t, 256 * 1024)))


def _choose_tile(hw, budget_tile):
    """Return (tile, hw_pad): tile is a multiple of 128, tile * kt == hw_pad >= hw."""
    hw128 = _round_up(hw, 128)
    if hw128 <= budget_tile:
        return hw128, hw128
    kt = -(-hw128 // budget_tile)                    # number of tiles (ceil)
    tile = _round_up(-(-hw128 // kt), 128)           # near-even split, lane aligned
    return tile, tile * kt


# --------------------------- fused single-kernel path ---------------------------
def _fused_kernel(x_ref, w_ref, g_ref, bt_ref, o_ref, *, m_true, eps):
    # x_ref: (Cin, Mpad) flattened batch; w_ref: (Cout, Cin); g/bt: (Cout, 1).
    xf = x_ref[...].astype(jnp.float32)
    y = jnp.dot(w_ref[...], xf, preferred_element_type=jnp.float32)      # (Cout, Mpad)
    minv = jnp.float32(1.0 / m_true)
    mean = jnp.sum(y, axis=1, keepdims=True) * minv                      # pad cols are 0
    col = jax.lax.broadcasted_iota(jnp.int32, y.shape, 1)
    d = jnp.where(col < m_true, y - mean, 0.0)                           # mask padding
    var = jnp.sum(d * d, axis=1, keepdims=True) * minv                   # centered var
    a = g_ref[...] * jax.lax.rsqrt(var + eps)
    c = bt_ref[...] - a * mean
    o_ref[...] = (a * y + c).astype(o_ref.dtype)


# ----------------------------- streaming two-pass path --------------------------
def _stats_kernel(x_ref, w_ref, s1_ref, s2_ref):
    # x_ref: (Cin, TILE) slice of one image; s1/s2: (Cout, 1) resident accumulators.
    @pl.when(jnp.logical_and(pl.program_id(1) == 0, pl.program_id(2) == 0))
    def _():
        s1_ref[...] = jnp.zeros_like(s1_ref)
        s2_ref[...] = jnp.zeros_like(s2_ref)

    y = jnp.dot(w_ref[...], x_ref[...].astype(jnp.float32),
                preferred_element_type=jnp.float32)
    s1_ref[...] += jnp.sum(y, axis=1, keepdims=True)
    s2_ref[...] += jnp.sum(y * y, axis=1, keepdims=True)


def _normalize_kernel(x_ref, ws_ref, c_ref, o_ref):
    # out = (a*W) @ x + c  -- one MXU op + one broadcast add per tile.
    y = jnp.dot(ws_ref[...], x_ref[...].astype(jnp.float32),
                preferred_element_type=jnp.float32)
    o_ref[...] = (y + c_ref[...]).astype(o_ref.dtype)


def conv_bias_batchnorm(x_nchw, w_oc, b, gamma, beta, *, eps=BN_EPS,
                        force_streaming=False):
    """x_nchw: (N, Cin, H, W); w_oc: (Cout, Cin) (squeezed 1x1 conv weight);
    b / gamma / beta: (Cout,).  Returns bn(conv(x)) in training mode, (N, Cout, H, W)."""
    n, cin, h, wd = x_nchw.shape
    cout = w_oc.shape[0]
    hw = h * wd
    m = n * hw

    w32 = w_oc.astype(jnp.float32)
    g2 = gamma.astype(jnp.float32)[:, None]
    bt2 = beta.astype(jnp.float32)[:, None]
    del b  # conv bias cancels exactly: BN subtracts the batch mean of y = Wx + b.

    vmem_limit = _vmem_limit_bytes()
    itemsize = jnp.dtype(x_nchw.dtype).itemsize
    compiler = functools.partial(pltpu.CompilerParams, vmem_limit_bytes=vmem_limit)

    # -------- fused path: everything (x, W@x, out) comfortably fits in VMEM ------
    mpad = _round_up(m, 128)
    fused_bytes = mpad * (cin * itemsize + cout * 4 + cout * itemsize)
    if not force_streaming and fused_bytes <= vmem_limit // 3:
        x2 = jnp.transpose(x_nchw.reshape(n, cin, hw), (1, 0, 2)).reshape(cin, m)
        if mpad != m:
            x2 = jnp.pad(x2, ((0, 0), (0, mpad - m)))
        out2 = pl.pallas_call(
            functools.partial(_fused_kernel, m_true=m, eps=eps),
            out_shape=jax.ShapeDtypeStruct((cout, mpad), x_nchw.dtype),
            grid=(1,),
            in_specs=[pl.BlockSpec((cin, mpad), lambda i: (0, 0)),
                      pl.BlockSpec((cout, cin), lambda i: (0, 0)),
                      pl.BlockSpec((cout, 1), lambda i: (0, 0)),
                      pl.BlockSpec((cout, 1), lambda i: (0, 0))],
            out_specs=pl.BlockSpec((cout, mpad), lambda i: (0, 0)),
            compiler_params=compiler(dimension_semantics=("arbitrary",)),
            cost_estimate=pl.CostEstimate(
                flops=2 * mpad * cin * cout + 6 * mpad * cout,
                transcendentals=cout,
                bytes_accessed=mpad * (cin + cout) * itemsize),
        )(x2, w32, g2, bt2)
        out = out2[:, :m].reshape(cout, n, hw)
        return jnp.transpose(out, (1, 0, 2)).reshape(n, cout, h, wd)

    # ----------------------- streaming path for large inputs ---------------------
    budget_tile = _budget_tile(cin, cout, itemsize, vmem_limit)
    tile, hw_pad = _choose_tile(hw, budget_tile)
    kt = hw_pad // tile

    x3 = x_nchw.reshape(n, cin, hw)
    if hw_pad != hw:
        # zero padding: contributes 0 to both sums; stores stay lane-dense.
        x3 = jnp.pad(x3, ((0, 0), (0, 0), (0, hw_pad - hw)))

    # Leading size-2 "parallel" partial axis -> both v7x TensorCores work on pass 1.
    if kt % 2 == 0 and kt >= 2:
        parts, np_, ktp = 2, n, kt // 2
        x_map1 = lambda c, i, t: (i, 0, c * ktp + t)
    elif n % 2 == 0 and n >= 2:
        parts, np_, ktp = 2, n // 2, kt
        x_map1 = lambda c, i, t: (c * np_ + i, 0, t)
    else:
        parts, np_, ktp = 1, n, kt
        x_map1 = lambda c, i, t: (i, 0, t)

    s1p, s2p = pl.pallas_call(
        _stats_kernel,
        out_shape=(jax.ShapeDtypeStruct((parts, cout, 1), jnp.float32),
                   jax.ShapeDtypeStruct((parts, cout, 1), jnp.float32)),
        grid=(parts, np_, ktp),
        in_specs=[pl.BlockSpec((pl.Squeezed(), cin, tile), x_map1),
                  pl.BlockSpec((cout, cin), lambda c, i, t: (0, 0))],
        out_specs=(pl.BlockSpec((pl.Squeezed(), cout, 1), lambda c, i, t: (c, 0, 0)),
                   pl.BlockSpec((pl.Squeezed(), cout, 1), lambda c, i, t: (c, 0, 0))),
        compiler_params=compiler(
            dimension_semantics=("parallel", "arbitrary", "arbitrary")),
        cost_estimate=pl.CostEstimate(
            flops=2 * n * hw_pad * cin * cout + 3 * n * hw_pad * cout,
            transcendentals=0,
            bytes_accessed=n * hw_pad * cin * itemsize),
    )(x3, w32)

    # Tiny host-side fold (O(Cout) scalars).
    # NOTE: E[y^2]-E[y]^2 can cancel when |mean| >> std; clamp var to >= 0.
    s1 = jnp.sum(s1p, axis=0)
    s2 = jnp.sum(s2p, axis=0)
    mean = s1 / m
    var = jnp.maximum(s2 / m - mean * mean, 0.0)
    a = g2 * jax.lax.rsqrt(var + eps)
    ws = a * w32                       # (Cout, Cin)
    c = bt2 - a * mean                 # (Cout, 1)

    out = pl.pallas_call(
        _normalize_kernel,
        out_shape=jax.ShapeDtypeStruct((n, cout, hw_pad), x_nchw.dtype),
        grid=(n, kt),
        in_specs=[pl.BlockSpec((pl.Squeezed(), cin, tile), lambda i, t: (i, 0, t)),
                  pl.BlockSpec((cout, cin), lambda i, t: (0, 0)),
                  pl.BlockSpec((cout, 1), lambda i, t: (0, 0))],
        out_specs=pl.BlockSpec((pl.Squeezed(), cout, tile), lambda i, t: (i, 0, t)),
        compiler_params=compiler(dimension_semantics=("parallel", "parallel")),
        cost_estimate=pl.CostEstimate(
            flops=2 * n * hw_pad * cin * cout + n * hw_pad * cout,
            transcendentals=0,
            bytes_accessed=n * hw_pad * (cin + cout) * itemsize),
    )(x3, ws, c)

    return out[:, :, :hw].reshape(n, cout, h, wd)


def reference(x_nchw, w_oc, b, gamma, beta, eps=BN_EPS):
    """Pure-JAX reference matching PyTorch bn(conv(x)) in training mode."""
    y = jnp.einsum("nchw,oc->nohw", x_nchw, w_oc) + b[None, :, None, None]
    mean = jnp.mean(y, axis=(0, 2, 3), keepdims=True)
    var = jnp.mean((y - mean) ** 2, axis=(0, 2, 3), keepdims=True)
    y_hat = (y - mean) / jnp.sqrt(var + eps)
    return y_hat * gamma[None, :, None, None] + beta[None, :, None, None]


if __name__ == "__main__":
    key = jax.random.PRNGKey(0)
    k_x, k_w, k_b, k_x2 = jax.random.split(key, 4)

    # Matches Conv2d(3, 5, kernel_size=1, bias=True) + input torch.rand(2, 3, 10, 10).
    N, CIN, COUT, H, W = 2, 3, 5, 10, 10
    x = jax.random.uniform(k_x, (N, CIN, H, W), dtype=jnp.float32)

    fan_in = CIN  # kernel_size 1
    bound = 1.0 / (fan_in ** 0.5)
    w_conv = jax.random.uniform(k_w, (COUT, CIN), jnp.float32, -bound, bound)
    b_conv = jax.random.uniform(k_b, (COUT,), jnp.float32, -bound, bound)
    # BatchNorm2d(5) default affine init: weight=1, bias=0.
    gamma = jnp.ones((COUT,), dtype=jnp.float32)
    beta = jnp.zeros((COUT,), dtype=jnp.float32)

    out = jax.block_until_ready(conv_bias_batchnorm(x, w_conv, b_conv, gamma, beta))
    ref = reference(x, w_conv, b_conv, gamma, beta)
    assert out.shape == (N, COUT, H, W), out.shape
    assert jnp.allclose(out, ref, atol=1e-4, rtol=1e-4), (
        float(jnp.max(jnp.abs(out - ref))))

    # Also exercise the streaming two-pass path (padded HW, megacore partials).
    x_big = jax.random.uniform(k_x2, (2, CIN, 40, 40), dtype=jnp.float32)
    out_big = jax.block_until_ready(
        conv_bias_batchnorm(x_big, w_conv, b_conv, gamma, beta, force_streaming=True))
    ref_big = reference(x_big, w_conv, b_conv, gamma, beta)
    assert jnp.allclose(out_big, ref_big, atol=1e-4, rtol=1e-4), (
        float(jnp.max(jnp.abs(out_big - ref_big))))

    print("KERNEL_OK")
</pallas_src>

<mosaic_0001>
module attributes {stable_mosaic.version = 11 : i64} {
  func.func @_fused_kernel(%arg0: i32, %arg1: memref<3x256xf32, #tpu.memory_space<vmem>>, %arg2: memref<5x3xf32, #tpu.memory_space<vmem>>, %arg3: memref<5x1xf32, #tpu.memory_space<vmem>>, %arg4: memref<5x1xf32, #tpu.memory_space<vmem>>, %arg5: memref<5x256xf32, #tpu.memory_space<vmem>>) attributes {dimension_semantics = [#tpu.dimension_semantics<arbitrary>], iteration_bounds = array<i64: 1>, scalar_prefetch = 0 : i64, scratch_operands = 0 : i64, tpu.core_type = #tpu.core_type<tc>, window_params = [{pipeline_mode = #tpu.pipeline_mode<synchronous>, transform_indices = @transform_0, window_bounds = array<i64: 3, 256>}, {pipeline_mode = #tpu.pipeline_mode<synchronous>, transform_indices = @transform_1, window_bounds = array<i64: 5, 3>}, {pipeline_mode = #tpu.pipeline_mode<synchronous>, transform_indices = @transform_2, window_bounds = array<i64: 5, 1>}, {pipeline_mode = #tpu.pipeline_mode<synchronous>, transform_indices = @transform_3, window_bounds = array<i64: 5, 1>}, {pipeline_mode = #tpu.pipeline_mode<synchronous>, transform_indices = @transform_4, window_bounds = array<i64: 5, 256>}]} {
    %c0 = arith.constant 0 : index
    %c0_0 = arith.constant 0 : index
    %0 = vector.load %arg1[%c0, %c0_0] : memref<3x256xf32, #tpu.memory_space<vmem>>, vector<3x256xf32>
    %c0_1 = arith.constant 0 : index
    %c0_2 = arith.constant 0 : index
    %1 = vector.load %arg2[%c0_1, %c0_2] : memref<5x3xf32, #tpu.memory_space<vmem>>, vector<5x3xf32>
    %cst = arith.constant dense<0.000000e+00> : vector<5x256xf32>
    %2 = tpu.matmul %1, %0, %cst {dimension_numbers = #tpu.dot_dimension_numbers<[1], [0], [0], [1], [0, 0, 1, 1], [], []>} : vector<5x3xf32>, vector<3x256xf32>, vector<5x256xf32> -> vector<5x256xf32>
    %cst_3 = arith.constant dense<0.000000e+00> : vector<5xf32>
    %3 = vector.multi_reduction <add>, %2, %cst_3 [1] : vector<5x256xf32> to vector<5xf32>
    %4 = vector.shape_cast %3 : vector<5xf32> to vector<5x1xf32>
    %cst_4 = arith.constant 5.000000e-03 : f32
    %5 = vector.broadcast %cst_4 : f32 to vector<5x1xf32>
    %6 = arith.mulf %4, %5 : vector<5x1xf32>
    %7 = tpu.iota {dimensions = array<i32: 1>} : vector<5x256xi32>
    %c200_i32 = arith.constant 200 : i32
    %8 = vector.broadcast %c200_i32 : i32 to vector<5x256xi32>
    %9 = arith.cmpi slt, %7, %8 : vector<5x256xi32>
    %10 = vector.broadcast %6 : vector<5x1xf32> to vector<5x256xf32>
    %11 = arith.subf %2, %10 : vector<5x256xf32>
    %cst_5 = arith.constant 0.000000e+00 : f32
    %12 = vector.broadcast %cst_5 : f32 to vector<5x256xf32>
    %13 = arith.select %9, %11, %12 : vector<5x256xi1>, vector<5x256xf32>
    %14 = arith.mulf %13, %13 : vector<5x256xf32>
    %cst_6 = arith.constant dense<0.000000e+00> : vector<5xf32>
    %15 = vector.multi_reduction <add>, %14, %cst_6 [1] : vector<5x256xf32> to vector<5xf32>
    %16 = vector.shape_cast %15 : vector<5xf32> to vector<5x1xf32>
    %cst_7 = arith.constant 5.000000e-03 : f32
    %17 = vector.broadcast %cst_7 : f32 to vector<5x1xf32>
    %18 = arith.mulf %16, %17 : vector<5x1xf32>
    %c0_8 = arith.constant 0 : index
    %c0_9 = arith.constant 0 : index
    %19 = vector.load %arg3[%c0_8, %c0_9] : memref<5x1xf32, #tpu.memory_space<vmem>>, vector<5x1xf32>
    %cst_10 = arith.constant 9.99999974E-6 : f32
    %20 = vector.broadcast %cst_10 : f32 to vector<5x1xf32>
    %21 = arith.addf %18, %20 : vector<5x1xf32>
    %22 = math.rsqrt %21 : vector<5x1xf32>
    %23 = arith.mulf %19, %22 : vector<5x1xf32>
    %c0_11 = arith.constant 0 : index
    %c0_12 = arith.constant 0 : index
    %24 = vector.load %arg4[%c0_11, %c0_12] : memref<5x1xf32, #tpu.memory_space<vmem>>, vector<5x1xf32>
    %25 = arith.mulf %23, %6 : vector<5x1xf32>
    %26 = arith.subf %24, %25 : vector<5x1xf32>
    %27 = vector.broadcast %23 : vector<5x1xf32> to vector<5x256xf32>
    %28 = arith.mulf %27, %2 : vector<5x256xf32>
    %29 = vector.broadcast %26 : vector<5x1xf32> to vector<5x256xf32>
    %30 = arith.addf %28, %29 : vector<5x256xf32>
    %c0_13 = arith.constant 0 : index
    %c0_14 = arith.constant 0 : index
    %31 = vector.load %arg5[%c0_13, %c0_14] : memref<5x256xf32, #tpu.memory_space<vmem>>, vector<5x256xf32>
    tpu.vector_store %arg5[%c0_13, %c0_14], %30 {strides = array<i32>} : memref<5x256xf32, #tpu.memory_space<vmem>>, vector<5x256xf32>,
    return
  }
  func.func @transform_0(%arg0: i32) -> (i32, i32) {
    %c0_i32 = arith.constant 0 : i32
    %c0_i32_0 = arith.constant 0 : i32
    %c0_i32_1 = arith.constant 0 : i32
    return %c0_i32, %c0_i32_0 : i32, i32
  }
  func.func @transform_1(%arg0: i32) -> (i32, i32) {
    %c0_i32 = arith.constant 0 : i32
    %c0_i32_0 = arith.constant 0 : i32
    %c0_i32_1 = arith.constant 0 : i32
    return %c0_i32, %c0_i32_0 : i32, i32
  }
  func.func @transform_2(%arg0: i32) -> (i32, i32) {
    %c0_i32 = arith.constant 0 : i32
    %c0_i32_0 = arith.constant 0 : i32
    %c0_i32_1 = arith.constant 0 : i32
    return %c0_i32, %c0_i32_0 : i32, i32
  }
  func.func @transform_3(%arg0: i32) -> (i32, i32) {
    %c0_i32 = arith.constant 0 : i32
    %c0_i32_0 = arith.constant 0 : i32
    %c0_i32_1 = arith.constant 0 : i32
    return %c0_i32, %c0_i32_0 : i32, i32
  }
  func.func @transform_4(%arg0: i32) -> (i32, i32) {
    %c0_i32 = arith.constant 0 : i32
    %c0_i32_0 = arith.constant 0 : i32
    %c0_i32_1 = arith.constant 0 : i32
    return %c0_i32, %c0_i32_0 : i32, i32
  }
}

</mosaic_0001>

<bundles_post_ra>
// kernel: tpu_custom_call.1
= control target key start
LH: loop header
LB: loop body
LE: loop exit
PB: predicated region body
PF: predicated region fallthrough
CT: control target
= control target key end

     0   :  { %vm26_vm0 = vcmask 1042432   ;;  %v196_v2 = vmov 0.0   ;;  %s243_s0 = inlined_call_operand.vmem [shape: f32[3,256], index: 0, kind: input, shape index: {}]   ;;  %s244_s1 = inlined_call_operand.vmem [shape: f32[5,3], index: 1, kind: input, shape index: {}]   ;;  %s245_s2 = inlined_call_operand.vmem [shape: f32[5,1], index: 2, kind: input, shape index: {}]   ;;  %s246_s3 = inlined_call_operand.vmem [shape: f32[5,1], index: 3, kind: input, shape index: {}]   ;;  %s247_s4 = inlined_call_operand.hbm [shape: f32[5,256], index: 4, kind: output, shape index: {}]  }
   0x1   :  { %v18_v0 = vld [vmem:[%s243_s0] sm:$0x77]  ;;  %95 = vmatprep.mubr.f32.mxu0 %v196_v2 }
   0x2   :  { %v21_v1 = vcombine.high %v18_v0, %v18_v0 }
   0x3   :  { %9 = vsyncpa [#allocation3], 0  ;;  %v19_v3 = vld [vmem:[%s244_s1] sm:$0x1f]  ;;  %vm22_vm1 = vcmask 23552   ;;  %vm102_vm2 = vcmask 1044480   ;;  %v109_v9 = vlaneseq }
   0x4   :  { %163 = vmatprep.subr.msk.mxu0 %vm26_vm0, %v21_v1  ;;  %v197_v22 = vmov 0   ;;  %v126_v26 = vld [vmem:[%s245_s2] sm:$0x1f]  ;;  %s198_s21 = smov [#allocation2]  }
   0x5   :  { %164 = vmatpush1.msk.msra.mxu0 %vm26_vm0, %v18_v0  ;;  %v110_v10 = vand.u32 127, %v109_v9  ;;  %169 = vset.pattern.permute.xlu1 %v197_v22  ;;  %v130_v29 = vld [vmem:[%s246_s3] sm:$0x1f]  ;;  %s155_s22 = sshll.u32 %s198_s21, 4  ;;  %s156_s22 = int_to_ptr.vmem [resolvable:$true] %s155_s22 }
   0x6   :  { %165 = vmatmul.mubr.msk.f32.vlgmr.msra.gmra.mxu0 %vm22_vm1, %v19_v3  ;;  %170 = vset.pattern.permute.xlu0 %v197_v22  ;;  %s174_s2 = scalar_lea.vmem %s156_s22, 256  ;;  %p179_p1 = scmp.lt.s32.totalorder %s156_s22, %s156_s22 }
   0x7   :  { %v111_v11 = vadd.s32 128, %v110_v10  ;;  %p175_p0 = scmp.ne.s32.totalorder %s156_s22, %s174_s2  ;;  %p180_p2 = scmp.lt.s32.totalorder %s174_s2, %s174_s2 }
   0x9   :  { %vm113_vm3 = vcmp.lt.s32.totalorder %v111_v11, 200  ;;  %p181_p3 = por %p180_p2, %p179_p1 }
   0xb   :  { %p182_p4 = pnand %p181_p3, %p175_p0 }
  0xc6   :  { %v97_v4 = vpop.f32.mrf.mxu0 }
  0xc7   :  { %v103_v6 = vsel %vm102_vm2, %v97_v4, 0.0 }
  0xc8   :  { %v99_v5 = vpop.f32.mrf.mxu0 }
  0xc9   :  { %v104_v7 = vsel %vm102_vm2, %v99_v5, 0.0 }
  0xca   :  { %v105_v8 = vadd.f32 %v104_v7, %v103_v6 }
  0xcc   :  { %106 = vadd.xlane.f32.xlu0 %v105_v8 }
 0x155   :  { %v107_v12 = vpop.xlane.xlu0 %106 }
 0x156   :  { %v108_v13 = vmul.f32 0.005, %v107_v12 }
 0x158   :  { %v115_v14 = vsub.f32 %v99_v5, %v108_v13  ;;  %v114_v15 = vsub.f32 %v97_v4, %v108_v13 }
 0x15a   :  { %v117_v16 = vsel %vm113_vm3, %v115_v14, 0.0  ;;  %v118_v17 = vmul.f32 %v114_v15, %v114_v15 }
 0x15b   :  { %v119_v18 = vmul.f32 %v117_v16, %v117_v16 }
 0x15c   :  { %v120_v19 = vsel %vm102_vm2, %v118_v17, 0.0 }
 0x15d   :  { %v121_v20 = vsel %vm102_vm2, %v119_v18, 0.0 }
 0x15e   :  { %v122_v21 = vadd.f32 %v121_v20, %v120_v19 }
 0x160   :  { %123 = vadd.xlane.f32.xlu0 %v122_v21 }
 0x1e9   :  { %v124_v23 = vpop.xlane.xlu0 %123 }
 0x1ea   :  { %v125_v24 = vmul.f32 0.005, %v124_v23 }
 0x1ec   :  { %v127_v25 = vadd.f32 1e-05, %v125_v24 }
 0x1ee   :  { %172 = vrsqrt.f32 %v127_v25 }
 0x1fb   :  { %v173_v27 = vpop.eup %172 }
 0x1fc   :  { %v129_v28 = vmul.f32 %v173_v27, %v126_v26 }
 0x1fe   :  { %135 = vperm.xlu1 %169, %v129_v28   ;;  %v131_v30 = vmul.f32 %v129_v28, %v108_v13 }
 0x200   :  { %v132_v31 = vsub.f32 %v130_v29, %v131_v30 }
 0x202   :  { %142 = vperm.xlu1 %169, %v132_v31  }
 0x279   :  { %v136_v32 = vpop.permute.xlu1 %135 }
 0x27a   :  { %v138_v33 = vmul.f32 %v136_v32, %v97_v4  ;;  %v139_v34 = vmul.f32 %v136_v32, %v99_v5 }
 0x27d   :  { %v143_v35 = vpop.permute.xlu1 %142 }
 0x27e   :  { %v145_v36 = vadd.f32 %v143_v35, %v138_v33  ;;  %v146_v37 = vadd.f32 %v143_v35, %v139_v34 }
 0x280   :  { %147 = vst [vmem:[#allocation2] sm:$0x1f] %v145_v36  ;;  %148 = vst [vmem:[#allocation2 + $0x8] sm:$0x1f] %v146_v37 }
 0x281   :  { %185 = shalt.err (!%p182_p4)
}
 0x282   :  { %158 = dma.vmem_to_hbm [thread:$0]  %s156_s22, 256, %s247_s4, [#allocation3]  }
 0x283   :  { %194 = dma.done.wait [#allocation3], 256  }
 0x284   :  { %195 = vsyncadd [#allocation3], 4294967040 }
 0x285   :  { %162 = vsyncpa [#allocation3], 1 }

</bundles_post_ra>
